<compile_context>
chip_gen: v7x
topology: tpu7x:2x2x1
jax: 0.10.0
libtpu: 0.0.40
codegen_flags: <defaults>
</compile_context>

<pallas_src>
import functools

import jax
import jax.numpy as jnp
from jax import lax
from jax.experimental import pallas as pl
from jax.experimental.pallas import tpu as pltpu

LANES = 128
CHUNK_ROWS = 64   # rows per inner accumulation chunk (multiple of 8/16/32)
MIN_ROWS = 64     # tiny inputs are padded up to this many rows (<= 32 KiB)


def _round_up(x, m):
    return ((x + m - 1) // m) * m


def _device_kind():
    try:
        return jax.devices()[0].device_kind.lower()
    except Exception:
        return ""


def _tensorcores_per_device():
    # Best effort: v5e/v6e (and v2/v3, where each JAX device is one core)
    # expose a single TensorCore per device; v4/v5p (megacore) and v7x expose
    # two, which the "parallel" leading grid axis can shard across.
    kind = _device_kind()
    if not kind:
        return 1
    if any(t in kind for t in ("lite", "v5e", "v6e", "trillium", "v2", "v3")):
        return 1
    return 2


def _target_block_bytes():
    # Per-input, per-buffer DMA granule. ~1 MiB is >=85% of HBM roofline on
    # v5e/v6e (and 3x2x1 MiB = 6 MiB fits v5e's 16 MiB default scoped VMEM);
    # v7x's ~3.2 TB/s HBM benefits from 2 MiB steps to amortize per-step
    # grid overhead.
    kind = _device_kind()
    if "v7" in kind or "7x" in kind:
        return 2 << 20
    return 1 << 20


def _unroll_for(n):
    # Pick an unroll factor that divides the static trip count.
    for u in (4, 2):
        if n % u == 0:
            return u
    return 1


def _uncertainty_l1_partial_kernel(
        pred_ref, tgt_ref, unc_ref, out_ref, *,
        uncertainty_weight, u_lo, u_hi,
        num_chunks, num_chunks_last, valid_rows_last, mask_last):
    """Accumulates a per-core (8, 128) partial sum of the element-wise loss."""
    step = pl.program_id(1)

    @pl.when(step == 0)
    def _():
        out_ref[...] = jnp.zeros_like(out_ref)

    def chunk_body(masked):
        def body(j, acc):
            r0 = pl.multiple_of(j * CHUNK_ROWS, CHUNK_ROWS)
            sl = pl.ds(r0, CHUNK_ROWS)
            p = pred_ref[sl, :].astype(jnp.float32)
            t = tgt_ref[sl, :].astype(jnp.float32)
            u = unc_ref[sl, :].astype(jnp.float32)
            uc = jnp.clip(u, u_lo, u_hi)
            e = jnp.abs(p - t) * jnp.exp(-uc) + uc * uncertainty_weight
            if masked:
                # Zero out rows past the valid row count of the (partial)
                # last block -- those rows contain stale VMEM garbage.
                row = (lax.broadcasted_iota(jnp.int32, e.shape, 0)
                       + j * CHUNK_ROWS)
                e = jnp.where(row < valid_rows_last, e, 0.0)
            # Fold (CHUNK_ROWS, 128) -> (8, 128): vreg-wise VPU adds, no XLU.
            return acc + e.reshape(-1, 8, LANES).sum(axis=0)
        return body

    def accumulate(masked, n):
        acc = lax.fori_loop(0, n, chunk_body(masked),
                            jnp.zeros((8, LANES), jnp.float32),
                            unroll=_unroll_for(n))
        out_ref[...] += acc

    if mask_last:
        is_last = jnp.logical_and(
            pl.program_id(0) == pl.num_programs(0) - 1,
            step == pl.num_programs(1) - 1)

        @pl.when(jnp.logical_not(is_last))
        def _():
            accumulate(False, num_chunks)

        @pl.when(is_last)
        def _():
            accumulate(True, num_chunks_last)
    else:
        accumulate(False, num_chunks)


def uncertainty_l1_loss(pred, target, uncertainty, *,
                        loss_weight=1.0,
                        uncertainty_weight=1.0,
                        uncertainty_range=(-10.0, 10.0),
                        reduction="mean"):
    """Pallas implementation of UncertaintyL1Loss.forward (weight=None path)."""
    # TODO(synk): the reference module always reduces with .mean() regardless of
    # `reduction` / reduction_override; we mirror that (argument validated only).
    assert reduction in ("none", "mean", "sum")
    assert pred.shape == target.shape == uncertainty.shape

    n_elem = 1
    for d in pred.shape:
        n_elem *= int(d)

    # Lane-dense (rows, 128) slab.  Pad the flat arrays only when strictly
    # required: ragged last lane row (n_elem % 128 != 0) or a tiny input
    # (< MIN_ROWS rows).  Block alignment is handled in-kernel, not by padding.
    padded_elems = max(_round_up(n_elem, LANES), MIN_ROWS * LANES)
    rows = padded_elems // LANES

    def to_slab(x):
        flat = jnp.ravel(x)
        if padded_elems != n_elem:
            # Zero padding contributes exactly 0 to the loss sum.
            flat = jnp.pad(flat, (0, padded_elems - n_elem))
        return flat.reshape(rows, LANES)

    p2d, t2d, u2d = to_slab(pred), to_slab(target), to_slab(uncertainty)

    max_itemsize = max(jnp.dtype(x.dtype).itemsize
                       for x in (pred, target, uncertainty))
    target_rows = _target_block_bytes() // (LANES * max_itemsize)
    target_rows = max(CHUNK_ROWS, (target_rows // CHUNK_ROWS) * CHUNK_ROWS)
    # block_rows is a multiple of CHUNK_ROWS and never exceeds the slab rows,
    # so only the LAST block can be partial (masked in-kernel).
    block_rows = min(target_rows, (rows // CHUNK_ROWS) * CHUNK_ROWS)
    n_blocks = pl.cdiv(rows, block_rows)

    # Leading "parallel" axis only where it can shard across TensorCores and
    # there is a handful of blocks per core (and an even split).
    num_cores = 1
    if _tensorcores_per_device() >= 2 and n_blocks >= 8 and n_blocks % 2 == 0:
        num_cores = 2
    steps = n_blocks // num_cores

    valid_rows_last = rows - (n_blocks - 1) * block_rows
    mask_last = valid_rows_last != block_rows
    num_chunks = block_rows // CHUNK_ROWS
    num_chunks_last = pl.cdiv(valid_rows_last, CHUNK_ROWS)

    kernel = functools.partial(
        _uncertainty_l1_partial_kernel,
        uncertainty_weight=float(uncertainty_weight),
        u_lo=float(uncertainty_range[0]),
        u_hi=float(uncertainty_range[1]),
        num_chunks=int(num_chunks),
        num_chunks_last=int(num_chunks_last),
        valid_rows_last=int(valid_rows_last),
        mask_last=bool(mask_last),
    )

    def in_map(c, i):
        return (c * steps + i, 0)

    in_spec = pl.BlockSpec((block_rows, LANES), in_map)
    out_spec = pl.BlockSpec((8, LANES), lambda c, i: (c, 0))

    # Explicit VMEM budget: 3 inputs x 2 buffers x block + resident outputs,
    # with 2x headroom (never below 16 MiB, never above 64 MiB).
    in_block_bytes = sum(block_rows * LANES * jnp.dtype(x.dtype).itemsize
                         for x in (p2d, t2d, u2d))
    vmem_need = 2 * in_block_bytes + 2 * num_cores * 8 * LANES * 4
    vmem_limit = int(min(max(2 * vmem_need, 16 << 20), 64 << 20))

    bytes_accessed = sum(int(x.size) * jnp.dtype(x.dtype).itemsize
                         for x in (p2d, t2d, u2d)) + num_cores * 8 * LANES * 4

    partials = pl.pallas_call(
        kernel,
        out_shape=jax.ShapeDtypeStruct((num_cores * 8, LANES), jnp.float32),
        grid_spec=pltpu.PrefetchScalarGridSpec(
            num_scalar_prefetch=0,
            grid=(num_cores, steps),
            in_specs=[in_spec, in_spec, in_spec],
            out_specs=out_spec,
        ),
        compiler_params=pltpu.CompilerParams(
            dimension_semantics=("parallel", "arbitrary"),
            vmem_limit_bytes=vmem_limit,
        ),
        cost_estimate=pl.CostEstimate(
            flops=7 * n_elem,
            transcendentals=n_elem,
            bytes_accessed=int(bytes_accessed),
        ),
    )(p2d, t2d, u2d)

    mean_loss = jnp.sum(partials) / jnp.float32(n_elem)
    return jnp.float32(loss_weight) * mean_loss


def _reference(pred, target, uncertainty, *, loss_weight=1.0,
               uncertainty_weight=1.0, uncertainty_range=(-10.0, 10.0)):
    uc = jnp.clip(uncertainty.astype(jnp.float32),
                  uncertainty_range[0], uncertainty_range[1])
    loss = jnp.abs(pred.astype(jnp.float32) - target.astype(jnp.float32)) \
           * jnp.exp(-uc) + uc * uncertainty_weight
    return jnp.float32(loss_weight) * jnp.mean(loss)


if __name__ == "__main__":
    key = jax.random.PRNGKey(0)
    k1, k2, k3 = jax.random.split(key, 3)

    # NCHW-style inputs: batch=2, channels=4, spatial=16x16.
    shape = (2, 4, 16, 16)
    pred = jax.random.normal(k1, shape, dtype=jnp.float32)
    target = jax.random.normal(k2, shape, dtype=jnp.float32)
    uncertainty = 3.0 * jax.random.normal(k3, shape, dtype=jnp.float32)

    out = uncertainty_l1_loss(pred, target, uncertainty,
                              loss_weight=1.0, uncertainty_weight=1.0)
    out = jax.block_until_ready(out)

    ref = _reference(pred, target, uncertainty)
    assert jnp.allclose(out, ref, rtol=1e-4, atol=1e-5), (out, ref)

    # Larger shape: exercises zero-copy slab (no pad), large blocks and the
    # in-kernel masking of the partial last block (4050 rows % 2048 != 0).
    shape2 = (2, 8, 180, 180)
    p2 = jax.random.normal(k1, shape2, dtype=jnp.float32)
    t2 = jax.random.normal(k2, shape2, dtype=jnp.float32)
    u2 = 3.0 * jax.random.normal(k3, shape2, dtype=jnp.float32)
    out2 = jax.block_until_ready(
        uncertainty_l1_loss(p2, t2, u2, loss_weight=0.5, uncertainty_weight=2.0))
    ref2 = _reference(p2, t2, u2, loss_weight=0.5, uncertainty_weight=2.0)
    assert jnp.allclose(out2, ref2, rtol=1e-4, atol=1e-5), (out2, ref2)

    print("KERNEL_OK")
</pallas_src>

<mosaic_0001>
module attributes {stable_mosaic.version = 11 : i64} {
  func.func @_uncertainty_l1_partial_kernel(%arg0: i32, %arg1: i32, %arg2: memref<64x128xf32, #tpu.memory_space<vmem>>, %arg3: memref<64x128xf32, #tpu.memory_space<vmem>>, %arg4: memref<64x128xf32, #tpu.memory_space<vmem>>, %arg5: memref<8x128xf32, #tpu.memory_space<vmem>>) attributes {dimension_semantics = [#tpu.dimension_semantics<parallel>, #tpu.dimension_semantics<arbitrary>], iteration_bounds = array<i64: 1, 1>, scalar_prefetch = 0 : i64, scratch_operands = 0 : i64, tpu.core_type = #tpu.core_type<tc>, window_params = [{transform_indices = @transform_0, window_bounds = array<i64: 64, 128>}, {transform_indices = @transform_1, window_bounds = array<i64: 64, 128>}, {transform_indices = @transform_2, window_bounds = array<i64: 64, 128>}, {transform_indices = @transform_3, window_bounds = array<i64: 8, 128>}]} {
    %c0_i32 = arith.constant 0 : i32
    %0 = arith.cmpi eq, %arg1, %c0_i32 : i32
    %1 = arith.extui %0 : i1 to i32
    %c0_i32_0 = arith.constant 0 : i32
    %2 = arith.cmpi ne, %1, %c0_i32_0 : i32
    scf.if %2 {
      %cst_13 = arith.constant 0.000000e+00 : f32
      %31 = vector.broadcast %cst_13 : f32 to vector<8x128xf32>
      %c0_14 = arith.constant 0 : index
      %c0_15 = arith.constant 0 : index
      %32 = vector.load %arg5[%c0_14, %c0_15] : memref<8x128xf32, #tpu.memory_space<vmem>>, vector<8x128xf32>
      tpu.vector_store %arg5[%c0_14, %c0_15], %31 {strides = array<i32>} : memref<8x128xf32, #tpu.memory_space<vmem>>, vector<8x128xf32>,
    } else {
    }
    %cst = arith.constant 0.000000e+00 : f32
    %3 = vector.broadcast %cst : f32 to vector<8x128xf32>
    %c0_i32_1 = arith.constant 0 : i32
    %c64_i32 = arith.constant 64 : i32
    %4 = arith.muli %c0_i32_1, %c64_i32 : i32
    %5 = tpu.assume_multiple %4, 64 : i32
    %6 = arith.index_cast %5 : i32 to index
    %c0 = arith.constant 0 : index
    %7 = vector.load %arg2[%6, %c0] : memref<64x128xf32, #tpu.memory_space<vmem>>, vector<64x128xf32>
    %8 = arith.index_cast %5 : i32 to index
    %c0_2 = arith.constant 0 : index
    %9 = vector.load %arg3[%8, %c0_2] : memref<64x128xf32, #tpu.memory_space<vmem>>, vector<64x128xf32>
    %10 = arith.index_cast %5 : i32 to index
    %c0_3 = arith.constant 0 : index
    %11 = vector.load %arg4[%10, %c0_3] : memref<64x128xf32, #tpu.memory_space<vmem>>, vector<64x128xf32>
    %cst_4 = arith.constant -1.000000e+01 : f32
    %cst_5 = arith.constant 1.000000e+01 : f32
    %12 = vector.broadcast %cst_4 : f32 to vector<64x128xf32>
    %13 = arith.maximumf %12, %11 : vector<64x128xf32>
    %14 = vector.broadcast %cst_5 : f32 to vector<64x128xf32>
    %15 = arith.minimumf %14, %13 : vector<64x128xf32>
    %16 = arith.subf %7, %9 : vector<64x128xf32>
    %17 = math.absf %16 : vector<64x128xf32>
    %cst_6 = arith.constant 0.000000e+00 : f32
    %18 = vector.broadcast %cst_6 : f32 to vector<64x128xf32>
    %19 = arith.subf %18, %15 : vector<64x128xf32>
    %20 = math.exp %19 : vector<64x128xf32>
    %21 = arith.mulf %17, %20 : vector<64x128xf32>
    %cst_7 = arith.constant 1.000000e+00 : f32
    %22 = vector.broadcast %cst_7 : f32 to vector<64x128xf32>
    %23 = arith.mulf %15, %22 : vector<64x128xf32>
    %24 = arith.addf %21, %23 : vector<64x128xf32>
    %25 = vector.shape_cast %24 : vector<64x128xf32> to vector<8x8x128xf32>
    %cst_8 = arith.constant dense<0.000000e+00> : vector<8x128xf32>
    %26 = vector.multi_reduction <add>, %25, %cst_8 [0] : vector<8x8x128xf32> to vector<8x128xf32>
    %27 = arith.addf %3, %26 : vector<8x128xf32>
    %c1_i32 = arith.constant 1 : i32
    %c0_9 = arith.constant 0 : index
    %c0_10 = arith.constant 0 : index
    %28 = vector.load %arg5[%c0_9, %c0_10] : memref<8x128xf32, #tpu.memory_space<vmem>>, vector<8x128xf32>
    %29 = arith.addf %28, %27 : vector<8x128xf32>
    %c0_11 = arith.constant 0 : index
    %c0_12 = arith.constant 0 : index
    %30 = vector.load %arg5[%c0_11, %c0_12] : memref<8x128xf32, #tpu.memory_space<vmem>>, vector<8x128xf32>
    tpu.vector_store %arg5[%c0_11, %c0_12], %29 {strides = array<i32>} : memref<8x128xf32, #tpu.memory_space<vmem>>, vector<8x128xf32>,
    return
  }
  func.func @transform_0(%arg0: i32, %arg1: i32) -> (i32, i32) {
    %c1_i32 = arith.constant 1 : i32
    %0 = arith.muli %arg0, %c1_i32 : i32
    %1 = arith.addi %0, %arg1 : i32
    %c0_i32 = arith.constant 0 : i32
    %c0_i32_0 = arith.constant 0 : i32
    return %1, %c0_i32 : i32, i32
  }
  func.func @transform_1(%arg0: i32, %arg1: i32) -> (i32, i32) {
    %c1_i32 = arith.constant 1 : i32
    %0 = arith.muli %arg0, %c1_i32 : i32
    %1 = arith.addi %0, %arg1 : i32
    %c0_i32 = arith.constant 0 : i32
    %c0_i32_0 = arith.constant 0 : i32
    return %1, %c0_i32 : i32, i32
  }
  func.func @transform_2(%arg0: i32, %arg1: i32) -> (i32, i32) {
    %c1_i32 = arith.constant 1 : i32
    %0 = arith.muli %arg0, %c1_i32 : i32
    %1 = arith.addi %0, %arg1 : i32
    %c0_i32 = arith.constant 0 : i32
    %c0_i32_0 = arith.constant 0 : i32
    return %1, %c0_i32 : i32, i32
  }
  func.func @transform_3(%arg0: i32, %arg1: i32) -> (i32, i32) {
    %c0_i32 = arith.constant 0 : i32
    %c0_i32_0 = arith.constant 0 : i32
    return %arg0, %c0_i32 : i32, i32
  }
}

</mosaic_0001>

<bundles_post_ra>
// kernel: tpu_custom_call.1
= control target key start
LH: loop header
LB: loop body
LE: loop exit
PB: predicated region body
PF: predicated region fallthrough
CT: control target
= control target key end

     0   :  { %8 = vsyncpa [#allocation3], 0  ;;  %s473_s0 = inlined_call_operand.hbm [shape: f32[64,128], index: 0, kind: input, shape index: {}]   ;;  %s474_s1 = inlined_call_operand.hbm [shape: f32[64,128], index: 1, kind: input, shape index: {}]   ;;  %s475_s2 = inlined_call_operand.hbm [shape: f32[64,128], index: 2, kind: input, shape index: {}]   ;;  %s476_s3 = inlined_call_operand.hbm [shape: f32[8,128], index: 3, kind: output, shape index: {}]  }
   0x1   :  { %9 = vsyncpa [#allocation6], 0 }
   0x2   :  { %10 = vsyncpa [#allocation4], 0  ;;  %s327_s12 = smov [#allocation5]   ;;  %s328_s14 = smov [#allocation2]  }
   0x3   :  { %s36_s13 = sshll.u32 %s327_s12, 4  ;;  %s20_s15 = sshll.u32 %s328_s14, 4  ;;  %s37_s13 = int_to_ptr.vmem [resolvable:$true] %s36_s13  ;;  %s353_s15 = int_to_ptr.vmem [resolvable:$true] %s20_s15 }
   0x4   :  { %s233_s18 = scalar_lea.hbm %s474_s1, 1024 }
   0x5   :  { %p234_p0 = scmp.ne.s32.totalorder %s474_s1, %s233_s18  ;;  %p237_p1 = scmp.lt.u32.totalorder %s233_s18, %s474_s1 }
   0x7   :  { %p239_p2 = pnand %p237_p1, %p234_p0 }
   0x9   :  { %242 = shalt.err (!%p239_p2)
}
   0xa   :  { %s243_s23 = scalar_lea.vmem %s37_s13, 1024  ;;  %p248_p4 = scmp.lt.s32.totalorder %s37_s13, %s37_s13 }
   0xb   :  { %p244_p3 = scmp.ne.s32.totalorder %s37_s13, %s243_s23  ;;  %p249_p5 = scmp.lt.s32.totalorder %s243_s23, %s243_s23 }
   0xd   :  { %p250_p6 = por %p249_p5, %p248_p4 }
   0xf   :  { %p251_p7 = pnand %p250_p6, %p244_p3 }
  0x11   :  { %254 = shalt.err (!%p251_p7)
}
  0x12   :  { %s329_s24 = smov 128   ;;  %s330_s25 = smov 8  }
  0x13   :  { %42 = dma.hbm_to_vmem [thread:$0]  %s474_s1, 1024, %s37_s13, [#allocation6], %s329_s24, %s329_s24, %s330_s25  }
  0x14   :  { %s255_s30 = scalar_lea.hbm %s473_s0, 1024 }
  0x15   :  { %p256_p8 = scmp.ne.s32.totalorder %s473_s0, %s255_s30  ;;  %p259_p9 = scmp.lt.u32.totalorder %s255_s30, %s473_s0 }
  0x17   :  { %p261_p10 = pnand %p259_p9, %p256_p8 }
  0x19   :  { %264 = shalt.err (!%p261_p10)
}
  0x1a   :  { %s265_s8 = scalar_lea.vmem %s353_s15, 1024  ;;  %p270_p12 = scmp.lt.s32.totalorder %s353_s15, %s353_s15 }
  0x1b   :  { %p266_p11 = scmp.ne.s32.totalorder %s353_s15, %s265_s8  ;;  %p271_p13 = scmp.lt.s32.totalorder %s265_s8, %s265_s8 }
  0x1d   :  { %p272_p0 = por %p271_p13, %p270_p12 }
  0x1f   :  { %p273_p1 = pnand %p272_p0, %p266_p11 }
  0x21   :  { %276 = shalt.err (!%p273_p1)
}
  0x22   :  { %26 = dma.hbm_to_vmem [thread:$0]  %s473_s0, 1024, %s353_s15, [#allocation3], %s329_s24, %s329_s24, %s330_s25  }
  0x23   :  { %s331_s10 = smov [#allocation7]   ;;  %s277_s14 = scalar_lea.hbm %s475_s2, 1024 }
  0x24   :  { %s52_s11 = sshll.u32 %s331_s10, 4  ;;  %p278_p2 = scmp.ne.s32.totalorder %s475_s2, %s277_s14  ;;  %s53_s11 = int_to_ptr.vmem [resolvable:$true] %s52_s11 }
  0x25   :  { %p281_p3 = scmp.lt.u32.totalorder %s277_s14, %s475_s2 }
  0x27   :  { %p283_p4 = pnand %p281_p3, %p278_p2 }
  0x29   :  { %286 = shalt.err (!%p283_p4)
}
  0x2a   :  { %s287_s20 = scalar_lea.vmem %s53_s11, 1024  ;;  %p292_p6 = scmp.lt.s32.totalorder %s53_s11, %s53_s11 }
  0x2b   :  { %p288_p5 = scmp.ne.s32.totalorder %s53_s11, %s287_s20  ;;  %p293_p7 = scmp.lt.s32.totalorder %s287_s20, %s287_s20 }
  0x2d   :  { %p294_p8 = por %p293_p7, %p292_p6 }
  0x2f   :  { %p295_p9 = pnand %p294_p8, %p288_p5 }
  0x31   :  { %298 = shalt.err (!%p295_p9)
}
  0x32   :  { %58 = dma.hbm_to_vmem [thread:$0]  %s475_s2, 1024, %s53_s11, [#allocation6], %s329_s24, %s329_s24, %s330_s25  }
  0x33   :  { %321 = dma.done.wait [#allocation3], 1024  }
  0x34   :  { %322 = vsyncadd [#allocation3], 4294966272 }
  0x35   :  { %323 = dma.done.wait [#allocation6], 2048  }
  0x36   :  { %324 = vsyncadd [#allocation6], 4294965248  ;;  %v405_v0 = vld [vmem:[#allocation7] sm:$0xff]  ;;  %v407_v1 = vld [vmem:[#allocation7 + $0x8] sm:$0xff]  ;;  %s332_s2 = smov [#allocation8]  }
  0x37   :  { %v409_v2 = vld [vmem:[#allocation7 + $0x10] sm:$0xff]  ;;  %v411_v3 = vld [vmem:[#allocation7 + $0x18] sm:$0xff]  ;;  %v413_v4 = vld [vmem:[#allocation7 + $0x20] sm:$0xff]  ;;  %v202_v5 = vclamps-f32 %v405_v0, 10.0  ;;  %v203_v9 = vclamps-f32 %v407_v1, 10.0  ;;  %s192_s21 = sshll.u32 %s332_s2, 4  ;;  %s193_s21 = int_to_ptr.vmem [resolvable:$true] %s192_s21 }
  0x38   :  { %v416_v6 = vld [vmem:[#allocation7 + $0x28] sm:$0xff]  ;;  %v418_v7 = vld [vmem:[#allocation7 + $0x30] sm:$0xff]  ;;  %v420_v8 = vld [vmem:[#allocation7 + $0x38] sm:$0xff]  ;;  %v204_v10 = vclamps-f32 %v409_v2, 10.0  ;;  %v205_v11 = vclamps-f32 %v411_v3, 10.0  ;;  %v206_v12 = vclamps-f32 %v413_v4, 10.0  ;;  %p304_p11 = scmp.lt.s32.totalorder %s193_s21, %s193_s21 }
  0x39   :  { %v207_v13 = vclamps-f32 %v416_v6, 10.0  ;;  %v208_v14 = vclamps-f32 %v418_v7, 10.0  ;;  %v209_v15 = vclamps-f32 %v420_v8, 10.0  ;;  %v135_v16 = vsub.f32 0.0, %v202_v5  ;;  %v79_v28 = vld [vmem:[#allocation2] sm:$0xff]  ;;  %v80_v31 = vld [vmem:[#allocation2 + $0x8] sm:$0xff] }
  0x3a   :  { %v136_v17 = vsub.f32 0.0, %v203_v9  ;;  %v137_v18 = vsub.f32 0.0, %v204_v10  ;;  %v138_v19 = vsub.f32 0.0, %v205_v11  ;;  %v139_v20 = vsub.f32 0.0, %v206_v12  ;;  %v87_v29 = vld [vmem:[#allocation5] sm:$0xff]  ;;  %v88_v32 = vld [vmem:[#allocation5 + $0x8] sm:$0xff] }
  0x3b   :  { %v140_v21 = vsub.f32 0.0, %v207_v13  ;;  %v141_v22 = vsub.f32 0.0, %v208_v14  ;;  %v143_v23 = vmul.f32 1.442695, %v135_v16  ;;  %v142_v26 = vsub.f32 0.0, %v209_v15  ;;  %v81_v34 = vld [vmem:[#allocation2 + $0x10] sm:$0xff] }
  0x3c   :  { %v145_v24 = vmul.f32 1.442695, %v136_v17  ;;  %v147_v25 = vmul.f32 1.442695, %v137_v18  ;;  %v149_v27 = vmul.f32 1.442695, %v138_v19  ;;  %v119_v39 = vsub.f32 %v79_v28, %v87_v29 }
  0x3d   :  { %217 = vpow2.f32 %v143_v23  ;;  %v151_v30 = vmul.f32 1.442695, %v139_v20  ;;  %v153_v33 = vmul.f32 1.442695, %v140_v21  ;;  %v89_v35 = vld [vmem:[#allocation5 + $0x10] sm:$0xff]  ;;  %v82_v37 = vld [vmem:[#allocation2 + $0x18] sm:$0xff]  ;;  %v120_v43 = vsub.f32 %v80_v31, %v88_v32 }
  0x3e   :  { %219 = vpow2.f32 %v145_v24  ;;  %v155_v36 = vmul.f32 1.442695, %v141_v22  ;;  %v90_v38 = vld [vmem:[#allocation5 + $0x18] sm:$0xff]  ;;  %v157_v40 = vmul.f32 1.442695, %v142_v26  ;;  %v83_v41 = vld [vmem:[#allocation2 + $0x20] sm:$0xff]  ;;  %v121_v46 = vsub.f32 %v81_v34, %v89_v35 }
  0x3f   :  { %221 = vpow2.f32 %v147_v25  ;;  %v91_v42 = vld [vmem:[#allocation5 + $0x20] sm:$0xff]  ;;  %v84_v44 = vld [vmem:[#allocation2 + $0x28] sm:$0xff]  ;;  %v122_v47 = vsub.f32 %v82_v37, %v90_v38  ;;  %v85_v48 = vld [vmem:[#allocation2 + $0x30] sm:$0xff]  ;;  %v127_v51 = vand.u32 2147483647, %v119_v39  ;;  %s299_s22 = scalar_lea.vmem %s193_s21, 128 }
  0x40   :  { %223 = vpow2.f32 %v149_v27  ;;  %v92_v45 = vld [vmem:[#allocation5 + $0x28] sm:$0xff]  ;;  %v93_v49 = vld [vmem:[#allocation5 + $0x30] sm:$0xff]  ;;  %v123_v50 = vsub.f32 %v83_v41, %v91_v42  ;;  %v128_v53 = vand.u32 2147483647, %v120_v43  ;;  %v86_v54 = vld [vmem:[#allocation2 + $0x38] sm:$0xff]  ;;  %p300_p10 = scmp.ne.s32.totalorder %s193_s21, %s299_s22  ;;  %p305_p12 = scmp.lt.s32.totalorder %s299_s22, %s299_s22 }
  0x41   :  { %225 = vpow2.f32 %v151_v30  ;;  %v124_v52 = vsub.f32 %v84_v44, %v92_v45  ;;  %v94_v55 = vld [vmem:[#allocation5 + $0x38] sm:$0xff]  ;;  %v129_v56 = vand.u32 2147483647, %v121_v46  ;;  %v125_v58 = vsub.f32 %v85_v48, %v93_v49 }
  0x42   :  { %227 = vpow2.f32 %v153_v33  ;;  %v130_v59 = vand.u32 2147483647, %v122_v47  ;;  %v131_v61 = vand.u32 2147483647, %v123_v50  ;;  %v126_v16 = vsub.f32 %v86_v54, %v94_v55  ;;  %p306_p13 = por %p305_p12, %p304_p11 }
  0x43   :  { %229 = vpow2.f32 %v155_v36  ;;  %v132_v17 = vand.u32 2147483647, %v124_v52  ;;  %v133_v23 = vand.u32 2147483647, %v125_v58 }
  0x44   :  { %231 = vpow2.f32 %v157_v40  ;;  %v134_v30 = vand.u32 2147483647, %v126_v16  ;;  %p307_p0 = pnand %p306_p13, %p300_p10 }
  0x47   :  { %v218_v57 = vpop.eup %217 }
  0x48   :  { %v220_v60 = vpop.eup %219  ;;  %v159_v62 = vmul.f32 %v218_v57, %v127_v51 }
  0x49   :  { %v222_v63 = vpop.eup %221  ;;  %v160_v18 = vmul.f32 %v220_v60, %v128_v53 }
  0x4a   :  { %v224_v19 = vpop.eup %223  ;;  %v161_v20 = vmul.f32 %v222_v63, %v129_v56  ;;  %v167_v21 = vadd.f32 %v202_v5, %v159_v62 }
  0x4b   :  { %v226_v22 = vpop.eup %225  ;;  %v162_v24 = vmul.f32 %v224_v19, %v130_v59  ;;  %v168_v25 = vadd.f32 %v203_v9, %v160_v18 }
  0x4c   :  { %v228_v26 = vpop.eup %227  ;;  %v163_v27 = vmul.f32 %v226_v22, %v131_v61  ;;  %v169_v28 = vadd.f32 %v204_v10, %v161_v20 }
  0x4d   :  { %v230_v29 = vpop.eup %229  ;;  %v164_v31 = vmul.f32 %v228_v26, %v132_v17  ;;  %v170_v32 = vadd.f32 %v205_v11, %v162_v24  ;;  %v175_v33 = vadd.f32 %v168_v25, %v167_v21 }
  0x4e   :  { %v232_v0 = vpop.eup %231  ;;  %v165_v5 = vmul.f32 %v230_v29, %v133_v23  ;;  %v171_v34 = vadd.f32 %v206_v12, %v163_v27 }
  0x4f   :  { %v176_v35 = vadd.f32 %v175_v33, %v169_v28  ;;  %v166_v1 = vmul.f32 %v232_v0, %v134_v30  ;;  %v172_v9 = vadd.f32 %v207_v13, %v164_v31 }
  0x50   :  { %v173_v2 = vadd.f32 %v208_v14, %v165_v5 }
  0x51   :  { %v177_v36 = vadd.f32 %v176_v35, %v170_v32  ;;  %v174_v3 = vadd.f32 %v209_v15, %v166_v1 }
  0x53   :  { %v178_v10 = vadd.f32 %v177_v36, %v171_v34 }
  0x55   :  { %v179_v11 = vadd.f32 %v178_v10, %v172_v9 }
  0x57   :  { %v180_v37 = vadd.f32 %v179_v11, %v173_v2 }
  0x59   :  { %v181_v38 = vadd.f32 %v180_v37, %v174_v3 }
  0x5b   :  { %185 = vst [vmem:[#allocation8] sm:$0xff] %v181_v38 }
  0x5c   :  { %310 = shalt.err (!%p307_p0)
}
  0x5d   :  { %s311_s25 = scalar_lea.hbm %s476_s3, 128 }
  0x5e   :  { %p312_p1 = scmp.ne.s32.totalorder %s476_s3, %s311_s25  ;;  %p315_p2 = scmp.lt.u32.totalorder %s311_s25, %s476_s3 }
  0x60   :  { %p317_p3 = pnand %p315_p2, %p312_p1 }
  0x62   :  { %320 = shalt.err (!%p317_p3)
}
  0x63   :  { %195 = dma.vmem_to_hbm [thread:$0]  %s193_s21, 128, %s476_s3, [#allocation4]  }
  0x64   :  { %325 = dma.done.wait [#allocation4], 128  }
  0x65   :  { %326 = vsyncadd [#allocation4], 4294967168 }
  0x66   :  { %199 = vsyncpa [#allocation3], 1 }
  0x67   :  { %200 = vsyncpa [#allocation6], 1 }
  0x68   :  { %201 = vsyncpa [#allocation4], 1 }

</bundles_post_ra>
